<compile_context>
chip_gen: v7x
topology: tpu7x:2x2x1
jax: 0.10.0
libtpu: 0.0.40
codegen_flags: <defaults>
</compile_context>

<pallas_src>
import functools

import jax
import jax.numpy as jnp
import numpy as np
from jax.experimental import pallas as pl
from jax.experimental.pallas import tpu as pltpu


def _cheb_kernel(x_ref, cstack_ref, w_ref, out_ref, *, K, N):
    # x_ref:      (N, B*C_in*T)            graph signal, cols = (b, c, t)
    # cstack_ref: (K*N, N)                 stacked transposed Chebyshev polys
    # w_ref:      (K, B*C_in*T, B*C_out*T) kron(I_B, theta_k, I_T) weights
    # out_ref:    (N, B*C_out*T)           cols = (b, o, t) -- 128 lanes, dense stores
    g = x_ref[...]                                                 # (N, B*C_in*T)

    # Stage 1: ALL K basis applications x all batches x all timesteps in ONE
    # MXU matmul: z[k*N + n, (b,c,t)] = sum_m cheb[k, m, n] * x[b, c, m, t]
    z = jnp.dot(cstack_ref[...], g, preferred_element_type=jnp.float32)

    # Stage 2: theta contraction, batched over (b, t) via the kron weights.
    # K is small & static -> unrolled; z row-slices are static (no data movement).
    acc = jnp.dot(z[0:N, :], w_ref[0], preferred_element_type=jnp.float32)
    for k in range(1, K):
        acc = acc + jnp.dot(z[k * N:(k + 1) * N, :], w_ref[k],
                            preferred_element_type=jnp.float32)

    out_ref[...] = acc.astype(out_ref.dtype)                       # (N, B*C_out*T)


def _normalized_laplacian(adj):
    # L = D^-1/2 A^T D^-1/2 with inf -> 0 (matches the scipy reference code)
    d = adj.sum(axis=1)
    d_inv_sqrt = jnp.where(d > 0, 1.0 / jnp.sqrt(d), 0.0)
    return (adj * d_inv_sqrt[None, :]).T * d_inv_sqrt[None, :]


def _cheb_polynomials(L, N, K):
    # Recursion kept in f32 regardless of activation dtype.
    L = L.astype(jnp.float32)
    polys = [jnp.eye(N, dtype=jnp.float32), L]
    for _ in range(2, K):
        polys.append(2.0 * L @ polys[-1] - polys[-2])
    return jnp.stack(polys[:K], axis=0)  # (K, N, N) f32


def cheb_conv(x, adj, theta):
    """x: (B, C_in, N, T), adj: (N, N), theta: (K, C_in, C_out) -> (B, C_out, N, T)"""
    K, c_in, c_out = theta.shape
    B, Cin, N, T = x.shape
    assert Cin == c_in
    itemsize = jnp.dtype(x.dtype).itemsize

    # --- one-time operand prep in XLA (outside the kernel's hot path) ---------
    L = _normalized_laplacian(adj.astype(jnp.float32))
    cheb = _cheb_polynomials(L, N, K)                                # (K, N, N) f32
    # Pre-transpose once so the kernel never issues an XLU transpose, and stack
    # the K basis matrices along rows so stage 1 is a single matmul.
    cstack = jnp.transpose(cheb, (0, 2, 1)).reshape(K * N, N).astype(x.dtype)

    # kron(I_B, theta_k, I_T):
    #   w[k, (b,c,t), (b',o,t')] = delta(b,b') * theta[k,c,o] * delta(t,t')
    # TODO(synk): weights scale as (B*T)^2; for large B*T keep B as a grid axis
    # and use kron(theta_k, I_T) per batch instead.
    eye_b = jnp.eye(B, dtype=x.dtype)
    eye_t = jnp.eye(T, dtype=x.dtype)
    w = (eye_b[None, :, None, None, :, None, None]
         * theta.astype(x.dtype)[:, None, :, None, None, :, None]
         * eye_t[None, None, None, :, None, None, :]
         ).reshape(K, B * c_in * T, B * c_out * T)

    # Graph signal as one 2-D slab: rows = vertices, cols = (batch, channel, time).
    xg = jnp.transpose(x, (2, 0, 1, 3)).reshape(N, B * c_in * T)     # (N, B*C_in*T)

    flops = 2 * (K * N * N * B * c_in * T
                 + K * N * (B * c_in * T) * (B * c_out * T))
    bytes_accessed = itemsize * (xg.size + cstack.size + w.size
                                 + N * B * c_out * T)

    kernel = functools.partial(_cheb_kernel, K=K, N=N)
    out_slab = pl.pallas_call(
        kernel,
        out_shape=jax.ShapeDtypeStruct((N, B * c_out * T), x.dtype),
        grid=(1,),
        in_specs=[
            pl.BlockSpec((N, B * c_in * T), lambda i: (0, 0)),
            pl.BlockSpec((K * N, N), lambda i: (0, 0)),
            pl.BlockSpec((K, B * c_in * T, B * c_out * T), lambda i: (0, 0, 0)),
        ],
        out_specs=pl.BlockSpec((N, B * c_out * T), lambda i: (0, 0)),
        compiler_params=pltpu.CompilerParams(
            dimension_semantics=("arbitrary",),
            vmem_limit_bytes=32 * 1024 * 1024),
        cost_estimate=pl.CostEstimate(flops=flops, transcendentals=0,
                                      bytes_accessed=bytes_accessed),
    )(xg, cstack, w)

    # (N, B*C_out*T) -> (B, C_out, N, T). The reshape is a free split of the
    # minor dim; the single remaining layout permute runs once in XLA.
    return jnp.transpose(out_slab.reshape(N, B, c_out, T), (1, 2, 0, 3))


def cheb_conv_reference(x, adj, theta):
    """Pure-JAX reference replicating the PyTorch loops (via einsum)."""
    K, c_in, c_out = theta.shape
    _, _, N, _ = x.shape
    L = _normalized_laplacian(adj.astype(jnp.float32))
    cheb = _cheb_polynomials(L, N, K).astype(x.dtype)
    # out[b,o,n,t] = sum_{k,m,c} cheb[k,m,n] * x[b,c,m,t] * theta[k,c,o]
    return jnp.einsum('kmn,bcmt,kco->bont', cheb, x, theta)


if __name__ == "__main__":
    # Small deterministic problem. N=24 matches torch.eye(24) in the reference.
    B, C_IN, N, T = 2, 4, 24, 8
    C_OUT, K = 8, 3

    key = jax.random.PRNGKey(0)
    kx, kadj, kth = jax.random.split(key, 3)

    x = jax.random.normal(kx, (B, C_IN, N, T), dtype=jnp.float32)
    adj = jax.random.uniform(kadj, (N, N), dtype=jnp.float32)            # nonneg -> valid D^-1/2
    theta = jax.random.normal(kth, (K, C_IN, C_OUT), dtype=jnp.float32)  # torch.randn init

    out = jax.block_until_ready(cheb_conv(x, adj, theta))
    ref = jax.block_until_ready(cheb_conv_reference(x, adj, theta))

    assert out.shape == (B, C_OUT, N, T), out.shape
    np.testing.assert_allclose(np.asarray(out), np.asarray(ref), rtol=1e-4, atol=1e-4)
    print("KERNEL_OK")
</pallas_src>

<mosaic_0001>
module attributes {stable_mosaic.version = 11 : i64} {
  func.func @_cheb_kernel(%arg0: i32, %arg1: memref<24x64xf32, #tpu.memory_space<vmem>>, %arg2: memref<72x24xf32, #tpu.memory_space<vmem>>, %arg3: memref<3x64x128xf32, #tpu.memory_space<vmem>>, %arg4: memref<24x128xf32, #tpu.memory_space<vmem>>) attributes {dimension_semantics = [#tpu.dimension_semantics<arbitrary>], iteration_bounds = array<i64: 1>, scalar_prefetch = 0 : i64, scratch_operands = 0 : i64, tpu.core_type = #tpu.core_type<tc>, window_params = [{pipeline_mode = #tpu.pipeline_mode<synchronous>, transform_indices = @transform_0, window_bounds = array<i64: 24, 64>}, {pipeline_mode = #tpu.pipeline_mode<synchronous>, transform_indices = @transform_1, window_bounds = array<i64: 72, 24>}, {pipeline_mode = #tpu.pipeline_mode<synchronous>, transform_indices = @transform_2, window_bounds = array<i64: 3, 64, 128>}, {pipeline_mode = #tpu.pipeline_mode<synchronous>, transform_indices = @transform_3, window_bounds = array<i64: 24, 128>}]} {
    %c0 = arith.constant 0 : index
    %c0_0 = arith.constant 0 : index
    %0 = vector.load %arg1[%c0, %c0_0] : memref<24x64xf32, #tpu.memory_space<vmem>>, vector<24x64xf32>
    %c0_1 = arith.constant 0 : index
    %c0_2 = arith.constant 0 : index
    %1 = vector.load %arg2[%c0_1, %c0_2] : memref<72x24xf32, #tpu.memory_space<vmem>>, vector<72x24xf32>
    %cst = arith.constant dense<0.000000e+00> : vector<72x64xf32>
    %2 = tpu.matmul %1, %0, %cst {dimension_numbers = #tpu.dot_dimension_numbers<[1], [0], [0], [1], [0, 0, 1, 1], [], []>} : vector<72x24xf32>, vector<24x64xf32>, vector<72x64xf32> -> vector<72x64xf32>
    %3 = vector.extract_strided_slice %2 {offsets = [0, 0], sizes = [24, 64], strides = [1, 1]} : vector<72x64xf32> to vector<24x64xf32>
    %c0_3 = arith.constant 0 : index
    %c0_4 = arith.constant 0 : index
    %c0_5 = arith.constant 0 : index
    %4 = vector.load %arg3[%c0_3, %c0_4, %c0_5] : memref<3x64x128xf32, #tpu.memory_space<vmem>>, vector<1x64x128xf32>
    %5 = vector.shape_cast %4 : vector<1x64x128xf32> to vector<64x128xf32>
    %cst_6 = arith.constant dense<0.000000e+00> : vector<24x128xf32>
    %6 = tpu.matmul %3, %5, %cst_6 {dimension_numbers = #tpu.dot_dimension_numbers<[1], [0], [0], [1], [0, 0, 1, 1], [], []>} : vector<24x64xf32>, vector<64x128xf32>, vector<24x128xf32> -> vector<24x128xf32>
    %7 = vector.extract_strided_slice %2 {offsets = [24, 0], sizes = [24, 64], strides = [1, 1]} : vector<72x64xf32> to vector<24x64xf32>
    %c1 = arith.constant 1 : index
    %c0_7 = arith.constant 0 : index
    %c0_8 = arith.constant 0 : index
    %8 = vector.load %arg3[%c1, %c0_7, %c0_8] : memref<3x64x128xf32, #tpu.memory_space<vmem>>, vector<1x64x128xf32>
    %9 = vector.shape_cast %8 : vector<1x64x128xf32> to vector<64x128xf32>
    %cst_9 = arith.constant dense<0.000000e+00> : vector<24x128xf32>
    %10 = tpu.matmul %7, %9, %cst_9 {dimension_numbers = #tpu.dot_dimension_numbers<[1], [0], [0], [1], [0, 0, 1, 1], [], []>} : vector<24x64xf32>, vector<64x128xf32>, vector<24x128xf32> -> vector<24x128xf32>
    %11 = arith.addf %6, %10 : vector<24x128xf32>
    %12 = vector.extract_strided_slice %2 {offsets = [48, 0], sizes = [24, 64], strides = [1, 1]} : vector<72x64xf32> to vector<24x64xf32>
    %c2 = arith.constant 2 : index
    %c0_10 = arith.constant 0 : index
    %c0_11 = arith.constant 0 : index
    %13 = vector.load %arg3[%c2, %c0_10, %c0_11] : memref<3x64x128xf32, #tpu.memory_space<vmem>>, vector<1x64x128xf32>
    %14 = vector.shape_cast %13 : vector<1x64x128xf32> to vector<64x128xf32>
    %cst_12 = arith.constant dense<0.000000e+00> : vector<24x128xf32>
    %15 = tpu.matmul %12, %14, %cst_12 {dimension_numbers = #tpu.dot_dimension_numbers<[1], [0], [0], [1], [0, 0, 1, 1], [], []>} : vector<24x64xf32>, vector<64x128xf32>, vector<24x128xf32> -> vector<24x128xf32>
    %16 = arith.addf %11, %15 : vector<24x128xf32>
    %c0_13 = arith.constant 0 : index
    %c0_14 = arith.constant 0 : index
    %17 = vector.load %arg4[%c0_13, %c0_14] : memref<24x128xf32, #tpu.memory_space<vmem>>, vector<24x128xf32>
    tpu.vector_store %arg4[%c0_13, %c0_14], %16 {strides = array<i32>} : memref<24x128xf32, #tpu.memory_space<vmem>>, vector<24x128xf32>,
    return
  }
  func.func @transform_0(%arg0: i32) -> (i32, i32) {
    %c0_i32 = arith.constant 0 : i32
    %c0_i32_0 = arith.constant 0 : i32
    %c0_i32_1 = arith.constant 0 : i32
    return %c0_i32, %c0_i32_0 : i32, i32
  }
  func.func @transform_1(%arg0: i32) -> (i32, i32) {
    %c0_i32 = arith.constant 0 : i32
    %c0_i32_0 = arith.constant 0 : i32
    %c0_i32_1 = arith.constant 0 : i32
    return %c0_i32, %c0_i32_0 : i32, i32
  }
  func.func @transform_2(%arg0: i32) -> (i32, i32, i32) {
    %c0_i32 = arith.constant 0 : i32
    %c0_i32_0 = arith.constant 0 : i32
    %c0_i32_1 = arith.constant 0 : i32
    %c0_i32_2 = arith.constant 0 : i32
    return %c0_i32, %c0_i32_0, %c0_i32_1 : i32, i32, i32
  }
  func.func @transform_3(%arg0: i32) -> (i32, i32) {
    %c0_i32 = arith.constant 0 : i32
    %c0_i32_0 = arith.constant 0 : i32
    %c0_i32_1 = arith.constant 0 : i32
    return %c0_i32, %c0_i32_0 : i32, i32
  }
}

</mosaic_0001>

<bundles_post_ra>
// kernel: tpu_custom_call.1
= control target key start
LH: loop header
LB: loop body
LE: loop exit
PB: predicated region body
PF: predicated region fallthrough
CT: control target
= control target key end

     0   :  { %8 = vsyncpa [#allocation3], 0  ;;  %s956_s0 = inlined_call_operand.vmem [shape: f32[24,64], index: 0, kind: input, shape index: {}]   ;;  %s957_s1 = inlined_call_operand.vmem [shape: f32[72,24], index: 1, kind: input, shape index: {}]   ;;  %s958_s2 = inlined_call_operand.hbm [shape: f32[3,64,128], index: 2, kind: input, shape index: {}]   ;;  %s959_s3 = inlined_call_operand.hbm [shape: f32[24,128], index: 3, kind: output, shape index: {}]  }
   0x1   :  { %9 = vsyncpa [#allocation4], 0  ;;  %s779_s12 = smov [#allocation2]   ;;  %s731_s16 = scalar_lea.hbm %s958_s2, 3072 }
   0x2   :  { %s19_s13 = sshll.u32 %s779_s12, 4  ;;  %p732_p0 = scmp.ne.s32.totalorder %s958_s2, %s731_s16  ;;  %s20_s13 = int_to_ptr.vmem [resolvable:$true] %s19_s13 }
   0x3   :  { %p735_p1 = scmp.lt.u32.totalorder %s731_s16, %s958_s2 }
   0x5   :  { %p737_p2 = pnand %p735_p1, %p732_p0 }
   0x7   :  { %740 = shalt.err (!%p737_p2)
}
   0x8   :  { %s741_s21 = scalar_lea.vmem %s20_s13, 3072  ;;  %p746_p4 = scmp.lt.s32.totalorder %s20_s13, %s20_s13 }
   0x9   :  { %p742_p3 = scmp.ne.s32.totalorder %s20_s13, %s741_s21  ;;  %p747_p5 = scmp.lt.s32.totalorder %s741_s21, %s741_s21 }
   0xb   :  { %p748_p6 = por %p747_p5, %p746_p4 }
   0xd   :  { %p749_p7 = pnand %p748_p6, %p742_p3 }
   0xf   :  { %752 = shalt.err (!%p749_p7)
}
  0x10   :  { %s780_s22 = smov 128   ;;  %s781_s23 = smov 8  }
  0x11   :  { %25 = dma.hbm_to_vmem [thread:$0]  %s958_s2, 3072, %s20_s13, [#allocation3], %s780_s22, %s780_s22, %s781_s23  }
  0x12   :  { %775 = dma.done.wait [#allocation3], 3072  }
  0x13   :  { %776 = vsyncadd [#allocation3], 4294964224  ;;  %v782_v0 = vmov 0.0|0.0   ;;  %vm783_vm0 = vmmov 0   ;;  %v784_v1 = vmov 0.0   ;;  %v29_v2 = vld [vmem:[%s956_s0] sm:$0xff] }
  0x14   :  { %667 = vmatprep.subr.bf16.mxu0 %v782_v0  ;;  %565 = vmatprep.mubr.msk.f32.mxu0 %vm783_vm0, %v784_v1  ;;  %v30_v3 = vld [vmem:[%s956_s0 + $0x8] sm:$0xff]  ;;  %v31_v5 = vld [vmem:[%s956_s0 + $0x10] sm:$0xff]  ;;  %v188_v6 = vld [vmem:[#allocation2 + $0x40] sm:$0xff]  ;;  %vm41_vm1 = vcmask 195584   ;;  %vm196_vm2 = vcmask 523264  }
  0x15   :  { %670 = vmatprep.subr.bf16.mxu1 %v782_v0  ;;  %608 = vmatprep.mubr.msk.f32.mxu1 %vm783_vm0, %v784_v1  ;;  %v668_v4 = vpack.c.bf16 %v30_v3, %v29_v2  ;;  %v189_v7 = vld [vmem:[#allocation2 + $0x48] sm:$0xff]  ;;  %v32_v8 = vld [vmem:[%s957_s1] sm:$0xff]  ;;  %v34_v11 = vld [vmem:[%s957_s1 + $0x10] sm:$0xff] }
  0x16   :  { %v671_v9 = vpack.c.bf16 %v189_v7, %v188_v6  ;;  %v33_v10 = vld [vmem:[%s957_s1 + $0x8] sm:$0xff]  ;;  %v35_v12 = vld [vmem:[%s957_s1 + $0x18] sm:$0xff]  ;;  %v36_v13 = vld [vmem:[%s957_s1 + $0x20] sm:$0xff] }
  0x17   :  { %669 = vmatpush3.bf16.msra.mxu0 %v668_v4  ;;  %v37_v14 = vld [vmem:[%s957_s1 + $0x28] sm:$0xff]  ;;  %v38_v15 = vld [vmem:[%s957_s1 + $0x30] sm:$0xff]  ;;  %v39_v16 = vld [vmem:[%s957_s1 + $0x38] sm:$0xff] }
  0x18   :  { %563 = vmatprep.subr.mxu0 %v784_v1  ;;  %672 = vmatpush3.bf16.msra.mxu1 %v671_v9  ;;  %v40_v17 = vld [vmem:[%s957_s1 + $0x40] sm:$0xff]  ;;  %v190_v18 = vld [vmem:[#allocation2 + $0x50] sm:$0xff]  ;;  %v191_v19 = vld [vmem:[#allocation2 + $0x58] sm:$0xff]  ;;  %s785_s1 = smov [#allocation5]  }
  0x19   :  { %673 = vmatprep.subr.bf16.mxu1 %v782_v0  ;;  %v674_v20 = vpack.c.bf16 %v191_v19, %v190_v18  ;;  %v376_v21 = vld [vmem:[#allocation2 + $0x80] sm:$0xff]  ;;  %v377_v22 = vld [vmem:[#allocation2 + $0x88] sm:$0xff]  ;;  %v194_v27 = vld [vmem:[#allocation2 + $0x70] sm:$0xff]  ;;  %s484_s21 = sshll.u32 %s785_s1, 4  ;;  %s485_s21 = int_to_ptr.vmem [resolvable:$true] %s484_s21 }
  0x1a   :  { %v893_v23 = vpack.c.bf16 %v377_v22, %v376_v21  ;;  %v192_v24 = vld [vmem:[#allocation2 + $0x60] sm:$0xff]  ;;  %v193_v25 = vld [vmem:[#allocation2 + $0x68] sm:$0xff]  ;;  %v195_v28 = vld [vmem:[#allocation2 + $0x78] sm:$0xff]  ;;  %s753_s24 = scalar_lea.vmem %s485_s21, 384  ;;  %p758_p9 = scmp.lt.s32.totalorder %s485_s21, %s485_s21 }
  0x1b   :  { %564 = vmatpush3.msra.mxu0 %v31_v5  ;;  %v677_v26 = vpack.c.bf16 %v193_v25, %v192_v24  ;;  %v680_v29 = vpack.c.bf16 %v195_v28, %v194_v27  ;;  %v378_v30 = vld [vmem:[#allocation2 + $0x90] sm:$0xff]  ;;  %v379_v31 = vld [vmem:[#allocation2 + $0x98] sm:$0xff]  ;;  %v380_v33 = vld [vmem:[#allocation2 + $0xa0] sm:$0xff]  ;;  %p754_p8 = scmp.ne.s32.totalorder %s485_s21, %s753_s24  ;;  %p759_p10 = scmp.lt.s32.totalorder %s753_s24, %s753_s24 }
  0x1c   :  { %566 = vmatmul.mubr.msk.f32.vlgmr.msra.gmra.mrb[0].mxu0 %vm41_vm1, %v32_v8  ;;  %694 = vmatprep.subr.bf16.mxu0 %v782_v0  ;;  %v900_v32 = vpack.c.bf16 %v379_v31, %v378_v30  ;;  %v381_v34 = vld [vmem:[#allocation2 + $0xa8] sm:$0xff]  ;;  %v382_v36 = vld [vmem:[#allocation2 + $0xb0] sm:$0xff]  ;;  %v383_v37 = vld [vmem:[#allocation2 + $0xb8] sm:$0xff] }
  0x1d   :  { %568 = vmatprep.mubr.msk.f32.mxu0 %vm783_vm0, %v784_v1  ;;  %675 = vmatpush3.bf16.msra.mxu1 %v674_v20  ;;  %v904_v35 = vpack.c.bf16 %v381_v34, %v380_v33  ;;  %v704_v38 = vpack.c.bf16 %v383_v37, %v382_v36  ;;  %v179_v43 = vld [vmem:[#allocation2] sm:$0xff]  ;;  %v180_v44 = vld [vmem:[#allocation2 + $0x8] sm:$0xff]  ;;  %v181_v48 = vld [vmem:[#allocation2 + $0x10] sm:$0xff]  ;;  %p760_p11 = por %p759_p10, %p758_p9 }
  0x1e   :  { %676 = vmatprep.subr.bf16.mxu1 %v782_v0  ;;  %696 = vmatpush3.bf16.msra.mxu0 %v893_v23  ;;  %v683_v47 = vpack.c.bf16 %v180_v44, %v179_v43  ;;  %v182_v49 = vld [vmem:[#allocation2 + $0x18] sm:$0xff]  ;;  %v183_v53 = vld [vmem:[#allocation2 + $0x20] sm:$0xff]  ;;  %v184_v54 = vld [vmem:[#allocation2 + $0x28] sm:$0xff] }
  0x1f   :  { %697 = vmatprep.subr.bf16.mxu0 %v782_v0  ;;  %v686_v52 = vpack.c.bf16 %v182_v49, %v181_v48  ;;  %v689_v57 = vpack.c.bf16 %v184_v54, %v183_v53  ;;  %v185_v58 = vld [vmem:[#allocation2 + $0x30] sm:$0xff]  ;;  %v186_v59 = vld [vmem:[#allocation2 + $0x38] sm:$0xff]  ;;  %p761_p12 = pnand %p760_p11, %p754_p8 }
  0x20   :  { %569 = vmatmul.mubr.msk.f32.gmra.mrb[2].mxu0 %vm41_vm1, %v33_v10  ;;  %v692_v62 = vpack.c.bf16 %v186_v59, %v185_v58 }
  0x21   :  { %571 = vmatprep.mubr.msk.f32.mxu0 %vm783_vm0, %v784_v1  ;;  %678 = vmatpush3.bf16.msra.mxu1 %v677_v26 }
  0x22   :  { %679 = vmatprep.subr.bf16.mxu1 %v782_v0  ;;  %699 = vmatpush3.bf16.msra.mxu0 %v900_v32 }
  0x23   :  { %700 = vmatprep.subr.bf16.mxu0 %v782_v0 }
  0x24   :  { %572 = vmatmul.mubr.msk.f32.gmra.mrb[4].mxu0 %vm41_vm1, %v34_v11 }
  0x25   :  { %574 = vmatprep.mubr.msk.f32.mxu0 %vm783_vm0, %v784_v1  ;;  %681 = vmatpush3.bf16.msra.mxu1 %v680_v29 }
  0x26   :  { %682 = vmatprep.subr.bf16.mxu1 %v782_v0  ;;  %702 = vmatpush3.bf16.msra.mxu0 %v904_v35 }
  0x27   :  { %703 = vmatprep.subr.bf16.mxu0 %v782_v0 }
  0x28   :  { %575 = vmatmul.mubr.msk.f32.gmra.mrb[6].mxu0 %vm41_vm1, %v35_v12 }
  0x29   :  { %577 = vmatprep.mubr.msk.f32.mxu0 %vm783_vm0, %v784_v1 }
  0x2a   :  { %705 = vmatpush3.bf16.msra.mxu0 %v704_v38 }
  0x2c   :  { %578 = vmatmul.mubr.msk.f32.gmra.mrb[8].mxu0 %vm41_vm1, %v36_v13 }
  0x2d   :  { %580 = vmatprep.mubr.msk.f32.mxu0 %vm783_vm0, %v784_v1 }
  0x30   :  { %581 = vmatmul.mubr.msk.f32.gmra.mrb[10].mxu0 %vm41_vm1, %v37_v14 }
  0x31   :  { %583 = vmatprep.mubr.msk.f32.mxu0 %vm783_vm0, %v784_v1 }
  0x34   :  { %584 = vmatmul.mubr.msk.f32.gmra.mrb[12].mxu0 %vm41_vm1, %v38_v15 }
  0x35   :  { %586 = vmatprep.mubr.msk.f32.mxu0 %vm783_vm0, %v784_v1 }
  0x38   :  { %587 = vmatmul.mubr.msk.f32.gmra.mrb[14].mxu0 %vm41_vm1, %v39_v16 }
  0x39   :  { %589 = vmatprep.mubr.msk.f32.mxu0 %vm783_vm0, %v784_v1 }
  0x3c   :  { %590 = vmatmul.mubr.msk.f32.gmra.mrb[16].mxu0 %vm41_vm1, %v40_v17 }
  0x3d   :  { %658 = vmatprep.mubr.msk.f32.mxu0 %vm783_vm0, %v784_v1 }
  0xef   :  { %v135_v39 = vpop.f32.mrb[0].mxu0 }
  0xf0   :  { %v567_v40 = vpop.f32.mrb[1].mxu0 }
  0xf3   :  { %v140_v41 = vpop.f32.mrb[2].mxu0 }
  0xf4   :  { %v570_v42 = vpop.f32.mrb[3].mxu0 }
  0xf7   :  { %v145_v45 = vpop.f32.mrb[4].mxu0 }
  0xf8   :  { %v573_v46 = vpop.f32.mrb[5].mxu0 }
  0xfb   :  { %v150_v50 = vpop.f32.mrb[6].mxu0 }
  0xfc   :  { %v576_v51 = vpop.f32.mrb[7].mxu0  ;;  %609 = vmatmul.mubr.msk.f32.vlgmr.msra.gmra.mrb[0].mxu1 %vm196_vm2, %v150_v50 }
  0xfd   :  { %684 = vmatpush3.bf16.msra.mxu1 %v683_v47  ;;  %611 = vmatprep.mubr.msk.f32.mxu1 %vm783_vm0, %v784_v1 }
  0xfe   :  { %685 = vmatprep.subr.bf16.mxu1 %v782_v0 }
  0xff   :  { %v155_v55 = vpop.f32.mrb[8].mxu0 }
 0x100   :  { %v579_v56 = vpop.f32.mrb[9].mxu0  ;;  %612 = vmatmul.mubr.msk.f32.gmra.mrb[2].mxu1 %vm196_vm2, %v155_v55 }
 0x101   :  { %687 = vmatpush3.bf16.msra.mxu1 %v686_v52  ;;  %614 = vmatprep.mubr.msk.f32.mxu1 %vm783_vm0, %v784_v1 }
 0x102   :  { %688 = vmatprep.subr.bf16.mxu1 %v782_v0 }
 0x103   :  { %v160_v60 = vpop.f32.mrb[10].mxu0 }
 0x104   :  { %v582_v61 = vpop.f32.mrb[11].mxu0  ;;  %615 = vmatmul.mubr.msk.f32.gmra.mrb[4].mxu1 %vm196_vm2, %v160_v60 }
 0x105   :  { %690 = vmatpush3.bf16.msra.mxu1 %v689_v57  ;;  %633 = vmatprep.mubr.msk.f32.mxu1 %vm783_vm0, %v784_v1 }
 0x106   :  { %691 = vmatprep.subr.bf16.mxu1 %v782_v0 }
 0x107   :  { %v165_v63 = vpop.f32.mrb[12].mxu0 }
 0x108   :  { %659 = vmatmul.mubr.msk.f32.vlgmr.msra.gmra.mrb[18].mxu0 %vm196_vm2, %v165_v63  ;;  %v585_v2 = vpop.f32.mrb[13].mxu0 }
 0x109   :  { %693 = vmatpush3.bf16.msra.mxu1 %v692_v62  ;;  %661 = vmatprep.mubr.msk.f32.mxu0 %vm783_vm0, %v784_v1 }
 0x10a   :  { %706 = vmatprep.subr.bf16.mxu1 %v782_v0 }
 0x10b   :  { %v170_v3 = vpop.f32.mrb[14].mxu0 }
 0x10c   :  { %634 = vmatmul.mubr.msk.f32.vlgmr.msra.gmra.mrb[0].mxu1 %vm196_vm2, %v135_v39  ;;  %662 = vmatmul.mubr.msk.f32.gmra.mrb[20].mxu0 %vm196_vm2, %v170_v3  ;;  %v588_v4 = vpop.f32.mrb[15].mxu0 }
 0x10d   :  { %710 = vmatpush3.bf16.msra.mxu1 %v893_v23  ;;  %636 = vmatprep.mubr.msk.f32.mxu1 %vm783_vm0, %v784_v1 }
 0x10e   :  { %707 = vmatprep.subr.bf16.mxu1 %v782_v0 }
 0x10f   :  { %v175_v5 = vpop.f32.mrb[16].mxu0 }
 0x110   :  { %637 = vmatmul.mubr.msk.f32.gmra.mrb[2].mxu1 %vm196_vm2, %v140_v41  ;;  %v591_v6 = vpop.f32.mrb[17].mxu0 }
 0x111   :  { %711 = vmatpush3.bf16.msra.mxu1 %v900_v32  ;;  %639 = vmatprep.mubr.msk.f32.mxu1 %vm783_vm0, %v784_v1 }
 0x112   :  { %708 = vmatprep.subr.bf16.mxu1 %v782_v0 }
 0x114   :  { %640 = vmatmul.mubr.msk.f32.gmra.mrb[4].mxu1 %vm196_vm2, %v145_v45 }
 0x115   :  { %712 = vmatpush3.bf16.msra.mxu1 %v904_v35  ;;  %664 = vmatprep.mubr.msk.f32.mxu1 %vm783_vm0, %v784_v1 }
 0x116   :  { %709 = vmatprep.subr.bf16.mxu1 %v782_v0 }
 0x119   :  { %713 = vmatpush3.bf16.msra.mxu1 %v704_v38 }
 0x11c   :  { %665 = vmatmul.mubr.msk.f32.vlgmr.msra.gmra.mrb[4].mxu1 %vm196_vm2, %v175_v5 }
 0x1db   :  { %v459_v7 = vpop.f32.mrb[18].mxu0 }
 0x1dc   :  { %v660_v8 = vpop.f32.mrb[19].mxu0 }
 0x1df   :  { %v361_v9 = vpop.f32.mrb[0].mxu1  ;;  %v464_v10 = vpop.f32.mrb[20].mxu0 }
 0x1e0   :  { %v714_v11 = vadd.f32 %v459_v7, %v361_v9  ;;  %v635_v12 = vpop.f32.mrb[1].mxu1  ;;  %v663_v13 = vpop.f32.mrb[21].mxu0 }
 0x1e2   :  { %476 = vst [vmem:[#allocation5] sm:$0xff] %v714_v11 }
 0x1e3   :  { %v366_v14 = vpop.f32.mrb[2].mxu1 }
 0x1e4   :  { %v715_v15 = vadd.f32 %v464_v10, %v366_v14  ;;  %v638_v16 = vpop.f32.mrb[3].mxu1 }
 0x1e6   :  { %477 = vst [vmem:[#allocation5 + $0x8] sm:$0xff] %v715_v15 }
 0x1ef   :  { %v469_v1 = vpop.f32.mrb[4].mxu1 }
 0x1f0   :  { %478 = vst [vmem:[#allocation5 + $0x10] sm:$0xff] %v469_v1  ;;  %v666_v0 = vpop.f32.mrb[5].mxu1 }
 0x1f1   :  { %764 = shalt.err (!%p761_p12)
}
 0x1f2   :  { %s765_s27 = scalar_lea.hbm %s959_s3, 384 }
 0x1f3   :  { %p766_p13 = scmp.ne.s32.totalorder %s959_s3, %s765_s27  ;;  %p769_p0 = scmp.lt.u32.totalorder %s765_s27, %s959_s3 }
 0x1f5   :  { %p771_p1 = pnand %p769_p0, %p766_p13 }
 0x1f7   :  { %774 = shalt.err (!%p771_p1)
}
 0x1f8   :  { %490 = dma.vmem_to_hbm [thread:$0]  %s485_s21, 384, %s959_s3, [#allocation4], %s780_s22, %s780_s22, %s781_s23  }
 0x1f9   :  { %777 = dma.done.wait [#allocation4], 384  }
 0x1fa   :  { %778 = vsyncadd [#allocation4], 4294966912 }
 0x1fb   :  { %494 = vsyncpa [#allocation3], 1 }
 0x1fc   :  { %495 = vsyncpa [#allocation4], 1 }

</bundles_post_ra>
